<compile_context>
chip_gen: v6e
topology: v6e:2x2x1
jax: 0.10.0
libtpu: 0.0.40
codegen_flags: <defaults>
</compile_context>

<pallas_src>
import functools
import math

import jax
import jax.numpy as jnp
from jax import lax
from jax.experimental import pallas as pl
from jax.experimental.pallas import tpu as pltpu

EPS = 1e-5  # nn.LayerNorm default

_PARALLEL = pltpu.CompilerParams(
    dimension_semantics=("parallel",),
    # generous for the tiny tiles used here; stays under v7x's 64 MiB physical
    # VMEM and above v5e's 16 MiB default scoped limit.
    vmem_limit_bytes=48 * 1024 * 1024,
)

# dot_general dimension numbers (heads = leading batch axis):
#   _DN_BMM   : 'hqk,hkd->hqd'  (contract last dim of lhs with middle of rhs)
#   _DN_BMM_T : 'hqd,hkd->hqk'  (contract last dims of both operands)
_DN_BMM = (((2,), (1,)), ((0,), (0,)))
_DN_BMM_T = (((2,), (2,)), ((0,), (0,)))


# ----------------------------------------------------------------------------
# In-kernel helpers
# ----------------------------------------------------------------------------
def _add_layernorm(y, res, gamma, beta, out_dtype):
    # y, res: [M, D] f32; gamma/beta: [1, D] f32
    z = y + res
    mu = jnp.mean(z, axis=-1, keepdims=True)
    var = jnp.mean(jnp.square(z - mu), axis=-1, keepdims=True)
    zn = (z - mu) * lax.rsqrt(var + EPS)
    return (zn * gamma + beta).astype(out_dtype)


# ----------------------------------------------------------------------------
# Kernels
# ----------------------------------------------------------------------------
def _attn_block_kernel(x_ref, kv_ref, wq_ref, bq_ref, wk_ref, bk_ref,
                       wv_ref, bv_ref, wo_ref, bo_ref, bias_ref,
                       g_ref, beta_ref, o_ref):
    """One batch element: MHA(x, kv, kv) -> out-proj -> +x -> LayerNorm."""
    dt = x_ref.dtype
    H, Dm, dh = wq_ref.shape
    Sq = x_ref.shape[0]
    Skv = kv_ref.shape[0]
    scale = 1.0 / math.sqrt(dh)

    x = x_ref[...]                                     # [Sq, D]
    xb = jnp.broadcast_to(x, (H, Sq, Dm))              # heads on leading axis
    kvb = jnp.broadcast_to(kv_ref[...], (H, Skv, Dm))

    # Per-head projections (bf16/f32 operands, f32 accumulation on the MXU).
    q = ((lax.dot_general(xb, wq_ref[...], _DN_BMM,
                          preferred_element_type=jnp.float32)
          + bq_ref[...]) * scale).astype(dt)           # [H, Sq, dh], scale folded in
    k = (lax.dot_general(kvb, wk_ref[...], _DN_BMM,
                         preferred_element_type=jnp.float32)
         + bk_ref[...]).astype(dt)                     # [H, Skv, dh]
    v = (lax.dot_general(kvb, wv_ref[...], _DN_BMM,
                         preferred_element_type=jnp.float32)
         + bv_ref[...]).astype(dt)                     # [H, Skv, dh]

    # Scores + softmax (f32 statistics).
    s = lax.dot_general(q, k, _DN_BMM_T,
                        preferred_element_type=jnp.float32)   # [H, Sq, Skv]
    s = s + bias_ref[...]                              # additive mask, broadcast over H
    m = jnp.max(s, axis=-1, keepdims=True)
    p = jnp.exp(s - m)
    l = jnp.sum(p, axis=-1, keepdims=True)

    # PV matmul in the input dtype; normalize the (small) output instead of p.
    ctx = lax.dot_general(p.astype(dt), v, _DN_BMM,
                          preferred_element_type=jnp.float32)  # [H, Sq, dh]
    # TODO(synk): approx=True is not bit-exact vs. PyTorch's divide; use
    # approx=False if strict parity is required.
    ctx = ctx * pl.reciprocal(l, approx=True)

    # Output projection fused with the head merge: batched matmul + head sum.
    y = lax.dot_general(ctx.astype(dt), wo_ref[...], _DN_BMM,
                        preferred_element_type=jnp.float32)    # [H, Sq, D]
    y = jnp.sum(y, axis=0) + bo_ref[...]                        # [Sq, D]

    # Residual add + LayerNorm epilogue.
    o_ref[...] = _add_layernorm(y, x.astype(jnp.float32),
                                g_ref[...], beta_ref[...], o_ref.dtype)


def _ffn_add_ln_kernel(x_ref, w1_ref, b1_ref, w2_ref, b2_ref, g_ref, beta_ref, o_ref):
    """relu(x@W1+b1)@W2+b2 + residual(x) -> LayerNorm (fused)."""
    dt = x_ref.dtype
    x = x_ref[...]
    h = jnp.maximum(jnp.dot(x, w1_ref[...],
                            preferred_element_type=jnp.float32) + b1_ref[...], 0.0)
    y = jnp.dot(h.astype(dt), w2_ref[...],
                preferred_element_type=jnp.float32) + b2_ref[...]
    o_ref[...] = _add_layernorm(y, x.astype(jnp.float32),
                                g_ref[...], beta_ref[...], o_ref.dtype)


# ----------------------------------------------------------------------------
# Wrappers
# ----------------------------------------------------------------------------
def _row_tile(M):
    # tile over the M = B*S axis; full array at toy shapes, 256 rows otherwise.
    return M if M <= 256 else 256


def attention_block(x, kv, p, bias, num_heads, gamma, beta):
    """Fused MHA(x, kv, kv) + out-proj + residual(x) + LayerNorm."""
    B, Sq, D = x.shape
    Skv = kv.shape[1]
    H = num_heads
    dh = D // H

    # Pre-shape per-head weights wrapper-side (cheap XLA reshapes on weights)
    # so the kernel never slices the lane dimension.
    # TODO(synk): in production, store the parameters in these layouts.
    def split_w(w):   # [D, H*dh] -> [H, D, dh]
        return jnp.transpose(w.reshape(D, H, dh), (1, 0, 2))

    def split_b(b):   # [H*dh] -> [H, 1, dh]
        return b.reshape(H, 1, dh)

    wq3, wk3, wv3 = split_w(p["wq"]), split_w(p["wk"]), split_w(p["wv"])
    bq3, bk3, bv3 = split_b(p["bq"]), split_b(p["bk"]), split_b(p["bv"])
    wo3 = p["wo"].reshape(H, dh, D)      # rows grouped by head
    bo = p["bo"].reshape(1, D)

    c3 = lambda b: (0, 0, 0)
    c2 = lambda b: (0, 0)
    return pl.pallas_call(
        _attn_block_kernel,
        out_shape=jax.ShapeDtypeStruct((B, Sq, D), x.dtype),
        grid=(B,),
        in_specs=[
            pl.BlockSpec((None, Sq, D), lambda b: (b, 0, 0)),   # x (query + residual)
            pl.BlockSpec((None, Skv, D), lambda b: (b, 0, 0)),  # kv source
            pl.BlockSpec((H, D, dh), c3),                        # Wq
            pl.BlockSpec((H, 1, dh), c3),                        # bq
            pl.BlockSpec((H, D, dh), c3),                        # Wk
            pl.BlockSpec((H, 1, dh), c3),                        # bk
            pl.BlockSpec((H, D, dh), c3),                        # Wv
            pl.BlockSpec((H, 1, dh), c3),                        # bv
            pl.BlockSpec((H, dh, D), c3),                        # Wo
            pl.BlockSpec((1, D), c2),                            # bo
            pl.BlockSpec((Sq, Skv), c2),                         # additive attn bias
            pl.BlockSpec((1, D), c2),                            # LN gamma
            pl.BlockSpec((1, D), c2),                            # LN beta
        ],
        out_specs=pl.BlockSpec((None, Sq, D), lambda b: (b, 0, 0)),
        compiler_params=_PARALLEL,
    )(x, kv, wq3, bq3, wk3, bk3, wv3, bv3, wo3, bo, bias,
      gamma.reshape(1, D), beta.reshape(1, D))


def ffn_add_ln(x, p, gamma, beta):
    B, S, D = x.shape
    F = p["w1"].shape[1]
    M = B * S
    TM = _row_tile(M)
    x2d = x.reshape(M, D)
    out = pl.pallas_call(
        _ffn_add_ln_kernel,
        out_shape=jax.ShapeDtypeStruct((M, D), x.dtype),
        grid=(pl.cdiv(M, TM),),
        in_specs=[
            pl.BlockSpec((TM, D), lambda i: (i, 0)),
            pl.BlockSpec((D, F), lambda i: (0, 0)),   # weights resident
            pl.BlockSpec((1, F), lambda i: (0, 0)),
            pl.BlockSpec((F, D), lambda i: (0, 0)),
            pl.BlockSpec((1, D), lambda i: (0, 0)),
            pl.BlockSpec((1, D), lambda i: (0, 0)),
            pl.BlockSpec((1, D), lambda i: (0, 0)),
        ],
        out_specs=pl.BlockSpec((TM, D), lambda i: (i, 0)),
        compiler_params=_PARALLEL,
    )(x2d, p["w1"], p["b1"].reshape(1, F), p["w2"], p["b2"].reshape(1, D),
      gamma.reshape(1, D), beta.reshape(1, D))
    return out.reshape(B, S, D)


def decoder_layer(params, x, enc_output, self_bias, cross_bias, *, num_heads):
    """Matches DecoderLayer.forward (dropout = identity, eval mode)."""
    # 1) masked self-attention + residual + LN (single fused kernel)
    x = attention_block(x, x, params["self_attn"], self_bias, num_heads,
                        params["ln1_g"], params["ln1_b"])
    # 2) cross-attention over encoder output + residual + LN (single fused kernel)
    x = attention_block(x, enc_output, params["cross_attn"], cross_bias, num_heads,
                        params["ln2_g"], params["ln2_b"])
    # 3) feed-forward + residual + LN (single fused kernel)
    x = ffn_add_ln(x, params["ffn"], params["ln3_g"], params["ln3_b"])
    return x


# ----------------------------------------------------------------------------
# Deterministic parameter init
# ----------------------------------------------------------------------------
def init_params(key, d_model, d_ff):
    def dense(k, d_in, d_out):
        kw, kb = jax.random.split(k)
        return (jax.random.normal(kw, (d_in, d_out), jnp.float32) * 0.02,
                jax.random.normal(kb, (d_out,), jnp.float32) * 0.02)

    def attn(k):
        kq, kk, kv, ko = jax.random.split(k, 4)
        wq, bq = dense(kq, d_model, d_model)
        wk, bk = dense(kk, d_model, d_model)
        wv, bv = dense(kv, d_model, d_model)
        wo, bo = dense(ko, d_model, d_model)
        return dict(wq=wq, bq=bq, wk=wk, bk=bk, wv=wv, bv=bv, wo=wo, bo=bo)

    k_self, k_cross, k1, k2 = jax.random.split(key, 4)
    w1, b1 = dense(k1, d_model, d_ff)
    w2, b2 = dense(k2, d_ff, d_model)
    ones = jnp.ones((d_model,), jnp.float32)
    zeros = jnp.zeros((d_model,), jnp.float32)
    return dict(
        self_attn=attn(k_self),
        cross_attn=attn(k_cross),
        ffn=dict(w1=w1, b1=b1, w2=w2, b2=b2),
        ln1_g=ones, ln1_b=zeros,
        ln2_g=ones, ln2_b=zeros,
        ln3_g=ones, ln3_b=zeros,
    )


# ----------------------------------------------------------------------------
if __name__ == "__main__":
    B, S, D, H, F = 2, 8, 32, 4, 64

    key = jax.random.PRNGKey(0)
    k_param, k_x, k_enc = jax.random.split(key, 3)

    params = init_params(k_param, D, F)
    x = jax.random.normal(k_x, (B, S, D), jnp.float32)
    enc_output = jax.random.normal(k_enc, (B, S, D), jnp.float32)

    # Additive attention biases: causal mask for self-attn, no mask for cross.
    causal = jnp.tril(jnp.ones((S, S), jnp.bool_))
    self_bias = jnp.where(causal, 0.0, -1e9).astype(jnp.float32)
    cross_bias = jnp.zeros((S, S), jnp.float32)   # [Sq, Skv]
    # TODO(synk): dropout layers are identity here (inference semantics).

    fwd = jax.jit(decoder_layer, static_argnames=("num_heads",))
    out = fwd(params, x, enc_output, self_bias, cross_bias, num_heads=H)
    out = jax.block_until_ready(out)

    assert out.shape == (B, S, D) and bool(jnp.all(jnp.isfinite(out)))
    print("KERNEL_OK")
</pallas_src>

<mosaic_0001>
module attributes {stable_mosaic.version = 11 : i64} {
  func.func @_attn_block_kernel(%arg0: i32, %arg1: memref<1x8x32xf32, #tpu.memory_space<vmem>>, %arg2: memref<1x8x32xf32, #tpu.memory_space<vmem>>, %arg3: memref<4x32x8xf32, #tpu.memory_space<vmem>>, %arg4: memref<4x1x8xf32, #tpu.memory_space<vmem>>, %arg5: memref<4x32x8xf32, #tpu.memory_space<vmem>>, %arg6: memref<4x1x8xf32, #tpu.memory_space<vmem>>, %arg7: memref<4x32x8xf32, #tpu.memory_space<vmem>>, %arg8: memref<4x1x8xf32, #tpu.memory_space<vmem>>, %arg9: memref<4x8x32xf32, #tpu.memory_space<vmem>>, %arg10: memref<1x32xf32, #tpu.memory_space<vmem>>, %arg11: memref<8x8xf32, #tpu.memory_space<vmem>>, %arg12: memref<1x32xf32, #tpu.memory_space<vmem>>, %arg13: memref<1x32xf32, #tpu.memory_space<vmem>>, %arg14: memref<1x8x32xf32, #tpu.memory_space<vmem>>) attributes {dimension_semantics = [#tpu.dimension_semantics<parallel>], iteration_bounds = array<i64: 2>, scalar_prefetch = 0 : i64, scratch_operands = 0 : i64, tpu.core_type = #tpu.core_type<tc>, window_params = [{transform_indices = @transform_0, window_bounds = array<i64: 1, 8, 32>}, {transform_indices = @transform_1, window_bounds = array<i64: 1, 8, 32>}, {pipeline_mode = #tpu.pipeline_mode<synchronous>, transform_indices = @transform_2, window_bounds = array<i64: 4, 32, 8>}, {pipeline_mode = #tpu.pipeline_mode<synchronous>, transform_indices = @transform_3, window_bounds = array<i64: 4, 1, 8>}, {pipeline_mode = #tpu.pipeline_mode<synchronous>, transform_indices = @transform_4, window_bounds = array<i64: 4, 32, 8>}, {pipeline_mode = #tpu.pipeline_mode<synchronous>, transform_indices = @transform_5, window_bounds = array<i64: 4, 1, 8>}, {pipeline_mode = #tpu.pipeline_mode<synchronous>, transform_indices = @transform_6, window_bounds = array<i64: 4, 32, 8>}, {pipeline_mode = #tpu.pipeline_mode<synchronous>, transform_indices = @transform_7, window_bounds = array<i64: 4, 1, 8>}, {pipeline_mode = #tpu.pipeline_mode<synchronous>, transform_indices = @transform_8, window_bounds = array<i64: 4, 8, 32>}, {pipeline_mode = #tpu.pipeline_mode<synchronous>, transform_indices = @transform_9, window_bounds = array<i64: 1, 32>}, {pipeline_mode = #tpu.pipeline_mode<synchronous>, transform_indices = @transform_10, window_bounds = array<i64: 8, 8>}, {pipeline_mode = #tpu.pipeline_mode<synchronous>, transform_indices = @transform_11, window_bounds = array<i64: 1, 32>}, {pipeline_mode = #tpu.pipeline_mode<synchronous>, transform_indices = @transform_12, window_bounds = array<i64: 1, 32>}, {transform_indices = @transform_13, window_bounds = array<i64: 1, 8, 32>}]} {
    %c0 = arith.constant 0 : index
    %c0_0 = arith.constant 0 : index
    %c0_1 = arith.constant 0 : index
    %0 = vector.load %arg1[%c0, %c0_0, %c0_1] : memref<1x8x32xf32, #tpu.memory_space<vmem>>, vector<1x8x32xf32>
    %1 = vector.shape_cast %0 : vector<1x8x32xf32> to vector<8x32xf32>
    %2 = vector.shape_cast %1 : vector<8x32xf32> to vector<1x8x32xf32>
    %3 = vector.broadcast %2 : vector<1x8x32xf32> to vector<4x8x32xf32>
    %c0_2 = arith.constant 0 : index
    %c0_3 = arith.constant 0 : index
    %c0_4 = arith.constant 0 : index
    %4 = vector.load %arg2[%c0_2, %c0_3, %c0_4] : memref<1x8x32xf32, #tpu.memory_space<vmem>>, vector<1x8x32xf32>
    %5 = vector.shape_cast %4 : vector<1x8x32xf32> to vector<8x32xf32>
    %6 = vector.shape_cast %5 : vector<8x32xf32> to vector<1x8x32xf32>
    %7 = vector.broadcast %6 : vector<1x8x32xf32> to vector<4x8x32xf32>
    %c0_5 = arith.constant 0 : index
    %c0_6 = arith.constant 0 : index
    %c0_7 = arith.constant 0 : index
    %8 = vector.load %arg3[%c0_5, %c0_6, %c0_7] : memref<4x32x8xf32, #tpu.memory_space<vmem>>, vector<4x32x8xf32>
    %cst = arith.constant dense<0.000000e+00> : vector<4x8x8xf32>
    %9 = tpu.matmul %3, %8, %cst {dimension_numbers = #tpu.dot_dimension_numbers<[2], [1], [1], [2], [0, 0, 0, 1, 1, 2], [0], [0]>} : vector<4x8x32xf32>, vector<4x32x8xf32>, vector<4x8x8xf32> -> vector<4x8x8xf32>
    %c0_8 = arith.constant 0 : index
    %c0_9 = arith.constant 0 : index
    %c0_10 = arith.constant 0 : index
    %10 = vector.load %arg4[%c0_8, %c0_9, %c0_10] : memref<4x1x8xf32, #tpu.memory_space<vmem>>, vector<4x1x8xf32>
    %11 = vector.broadcast %10 : vector<4x1x8xf32> to vector<4x8x8xf32>
    %12 = arith.addf %9, %11 : vector<4x8x8xf32>
    %cst_11 = arith.constant 0.353553385 : f32
    %13 = vector.broadcast %cst_11 : f32 to vector<4x8x8xf32>
    %14 = arith.mulf %12, %13 : vector<4x8x8xf32>
    %c0_12 = arith.constant 0 : index
    %c0_13 = arith.constant 0 : index
    %c0_14 = arith.constant 0 : index
    %15 = vector.load %arg5[%c0_12, %c0_13, %c0_14] : memref<4x32x8xf32, #tpu.memory_space<vmem>>, vector<4x32x8xf32>
    %cst_15 = arith.constant dense<0.000000e+00> : vector<4x8x8xf32>
    %16 = tpu.matmul %7, %15, %cst_15 {dimension_numbers = #tpu.dot_dimension_numbers<[2], [1], [1], [2], [0, 0, 0, 1, 1, 2], [0], [0]>} : vector<4x8x32xf32>, vector<4x32x8xf32>, vector<4x8x8xf32> -> vector<4x8x8xf32>
    %c0_16 = arith.constant 0 : index
    %c0_17 = arith.constant 0 : index
    %c0_18 = arith.constant 0 : index
    %17 = vector.load %arg6[%c0_16, %c0_17, %c0_18] : memref<4x1x8xf32, #tpu.memory_space<vmem>>, vector<4x1x8xf32>
    %18 = vector.broadcast %17 : vector<4x1x8xf32> to vector<4x8x8xf32>
    %19 = arith.addf %16, %18 : vector<4x8x8xf32>
    %c0_19 = arith.constant 0 : index
    %c0_20 = arith.constant 0 : index
    %c0_21 = arith.constant 0 : index
    %20 = vector.load %arg7[%c0_19, %c0_20, %c0_21] : memref<4x32x8xf32, #tpu.memory_space<vmem>>, vector<4x32x8xf32>
    %cst_22 = arith.constant dense<0.000000e+00> : vector<4x8x8xf32>
    %21 = tpu.matmul %7, %20, %cst_22 {dimension_numbers = #tpu.dot_dimension_numbers<[2], [1], [1], [2], [0, 0, 0, 1, 1, 2], [0], [0]>} : vector<4x8x32xf32>, vector<4x32x8xf32>, vector<4x8x8xf32> -> vector<4x8x8xf32>
    %c0_23 = arith.constant 0 : index
    %c0_24 = arith.constant 0 : index
    %c0_25 = arith.constant 0 : index
    %22 = vector.load %arg8[%c0_23, %c0_24, %c0_25] : memref<4x1x8xf32, #tpu.memory_space<vmem>>, vector<4x1x8xf32>
    %23 = vector.broadcast %22 : vector<4x1x8xf32> to vector<4x8x8xf32>
    %24 = arith.addf %21, %23 : vector<4x8x8xf32>
    %cst_26 = arith.constant dense<0.000000e+00> : vector<4x8x8xf32>
    %25 = tpu.matmul %14, %19, %cst_26 {dimension_numbers = #tpu.dot_dimension_numbers<[2], [2], [1], [1], [0, 0, 0, 1, 1, 1], [0], [0]>} : vector<4x8x8xf32>, vector<4x8x8xf32>, vector<4x8x8xf32> -> vector<4x8x8xf32>
    %c0_27 = arith.constant 0 : index
    %c0_28 = arith.constant 0 : index
    %26 = vector.load %arg11[%c0_27, %c0_28] : memref<8x8xf32, #tpu.memory_space<vmem>>, vector<8x8xf32>
    %27 = vector.shape_cast %26 : vector<8x8xf32> to vector<1x8x8xf32>
    %28 = vector.broadcast %27 : vector<1x8x8xf32> to vector<4x8x8xf32>
    %29 = arith.addf %25, %28 : vector<4x8x8xf32>
    %cst_29 = arith.constant dense<0xFF800000> : vector<4x8xf32>
    %30 = vector.multi_reduction <maximumf>, %29, %cst_29 [2] : vector<4x8x8xf32> to vector<4x8xf32>
    %31 = vector.shape_cast %30 : vector<4x8xf32> to vector<4x8x1xf32>
    %32 = vector.broadcast %31 : vector<4x8x1xf32> to vector<4x8x8xf32>
    %33 = arith.subf %29, %32 : vector<4x8x8xf32>
    %34 = math.exp %33 : vector<4x8x8xf32>
    %cst_30 = arith.constant dense<0.000000e+00> : vector<4x8xf32>
    %35 = vector.multi_reduction <add>, %34, %cst_30 [2] : vector<4x8x8xf32> to vector<4x8xf32>
    %36 = vector.shape_cast %35 : vector<4x8xf32> to vector<4x8x1xf32>
    %cst_31 = arith.constant dense<0.000000e+00> : vector<4x8x8xf32>
    %37 = tpu.matmul %34, %24, %cst_31 {dimension_numbers = #tpu.dot_dimension_numbers<[2], [1], [1], [2], [0, 0, 0, 1, 1, 2], [0], [0]>} : vector<4x8x8xf32>, vector<4x8x8xf32>, vector<4x8x8xf32> -> vector<4x8x8xf32>
    %38 = tpu.reciprocal %36 {approx = true} : vector<4x8x1xf32> -> vector<4x8x1xf32>
    %39 = vector.broadcast %38 : vector<4x8x1xf32> to vector<4x8x8xf32>
    %40 = arith.mulf %37, %39 : vector<4x8x8xf32>
    %c0_32 = arith.constant 0 : index
    %c0_33 = arith.constant 0 : index
    %c0_34 = arith.constant 0 : index
    %41 = vector.load %arg9[%c0_32, %c0_33, %c0_34] : memref<4x8x32xf32, #tpu.memory_space<vmem>>, vector<4x8x32xf32>
    %cst_35 = arith.constant dense<0.000000e+00> : vector<4x8x32xf32>
    %42 = tpu.matmul %40, %41, %cst_35 {dimension_numbers = #tpu.dot_dimension_numbers<[2], [1], [1], [2], [0, 0, 0, 1, 1, 2], [0], [0]>} : vector<4x8x8xf32>, vector<4x8x32xf32>, vector<4x8x32xf32> -> vector<4x8x32xf32>
    %cst_36 = arith.constant dense<0.000000e+00> : vector<8x32xf32>
    %43 = vector.multi_reduction <add>, %42, %cst_36 [0] : vector<4x8x32xf32> to vector<8x32xf32>
    %c0_37 = arith.constant 0 : index
    %c0_38 = arith.constant 0 : index
    %44 = vector.load %arg10[%c0_37, %c0_38] : memref<1x32xf32, #tpu.memory_space<vmem>>, vector<1x32xf32>
    %45 = vector.broadcast %44 : vector<1x32xf32> to vector<8x32xf32>
    %46 = arith.addf %43, %45 : vector<8x32xf32>
    %c0_39 = arith.constant 0 : index
    %c0_40 = arith.constant 0 : index
    %47 = vector.load %arg12[%c0_39, %c0_40] : memref<1x32xf32, #tpu.memory_space<vmem>>, vector<1x32xf32>
    %c0_41 = arith.constant 0 : index
    %c0_42 = arith.constant 0 : index
    %48 = vector.load %arg13[%c0_41, %c0_42] : memref<1x32xf32, #tpu.memory_space<vmem>>, vector<1x32xf32>
    %49 = arith.addf %46, %1 : vector<8x32xf32>
    %cst_43 = arith.constant dense<0.000000e+00> : vector<8xf32>
    %50 = vector.multi_reduction <add>, %49, %cst_43 [1] : vector<8x32xf32> to vector<8xf32>
    %51 = vector.shape_cast %50 : vector<8xf32> to vector<8x1xf32>
    %cst_44 = arith.constant 3.200000e+01 : f32
    %52 = vector.broadcast %cst_44 : f32 to vector<8x1xf32>
    %53 = arith.divf %51, %52 : vector<8x1xf32>
    %54 = vector.broadcast %53 : vector<8x1xf32> to vector<8x32xf32>
    %55 = arith.subf %49, %54 : vector<8x32xf32>
    %56 = arith.mulf %55, %55 : vector<8x32xf32>
    %cst_45 = arith.constant dense<0.000000e+00> : vector<8xf32>
    %57 = vector.multi_reduction <add>, %56, %cst_45 [1] : vector<8x32xf32> to vector<8xf32>
    %58 = vector.shape_cast %57 : vector<8xf32> to vector<8x1xf32>
    %cst_46 = arith.constant 3.200000e+01 : f32
    %59 = vector.broadcast %cst_46 : f32 to vector<8x1xf32>
    %60 = arith.divf %58, %59 : vector<8x1xf32>
    %61 = vector.broadcast %53 : vector<8x1xf32> to vector<8x32xf32>
    %62 = arith.subf %49, %61 : vector<8x32xf32>
    %cst_47 = arith.constant 9.99999974E-6 : f32
    %63 = vector.broadcast %cst_47 : f32 to vector<8x1xf32>
    %64 = arith.addf %60, %63 : vector<8x1xf32>
    %65 = math.rsqrt %64 : vector<8x1xf32>
    %66 = vector.broadcast %65 : vector<8x1xf32> to vector<8x32xf32>
    %67 = arith.mulf %62, %66 : vector<8x32xf32>
    %68 = vector.broadcast %47 : vector<1x32xf32> to vector<8x32xf32>
    %69 = arith.mulf %67, %68 : vector<8x32xf32>
    %70 = vector.broadcast %48 : vector<1x32xf32> to vector<8x32xf32>
    %71 = arith.addf %69, %70 : vector<8x32xf32>
    %c0_48 = arith.constant 0 : index
    %c0_49 = arith.constant 0 : index
    %c0_50 = arith.constant 0 : index
    %72 = vector.load %arg14[%c0_48, %c0_49, %c0_50] : memref<1x8x32xf32, #tpu.memory_space<vmem>>, vector<1x8x32xf32>
    %73 = vector.shape_cast %72 : vector<1x8x32xf32> to vector<8x32xf32>
    %74 = vector.shape_cast %71 : vector<8x32xf32> to vector<1x8x32xf32>
    tpu.vector_store %arg14[%c0_48, %c0_49, %c0_50], %74 {strides = array<i32>} : memref<1x8x32xf32, #tpu.memory_space<vmem>>, vector<1x8x32xf32>,
    return
  }
  func.func @transform_0(%arg0: i32) -> (i32, i32, i32) {
    %c0_i32 = arith.constant 0 : i32
    %c0_i32_0 = arith.constant 0 : i32
    %c0_i32_1 = arith.constant 0 : i32
    return %arg0, %c0_i32, %c0_i32_0 : i32, i32, i32
  }
  func.func @transform_1(%arg0: i32) -> (i32, i32, i32) {
    %c0_i32 = arith.constant 0 : i32
    %c0_i32_0 = arith.constant 0 : i32
    %c0_i32_1 = arith.constant 0 : i32
    return %arg0, %c0_i32, %c0_i32_0 : i32, i32, i32
  }
  func.func @transform_2(%arg0: i32) -> (i32, i32, i32) {
    %c0_i32 = arith.constant 0 : i32
    %c0_i32_0 = arith.constant 0 : i32
    %c0_i32_1 = arith.constant 0 : i32
    %c0_i32_2 = arith.constant 0 : i32
    return %c0_i32, %c0_i32_0, %c0_i32_1 : i32, i32, i32
  }
  func.func @transform_3(%arg0: i32) -> (i32, i32, i32) {
    %c0_i32 = arith.constant 0 : i32
    %c0_i32_0 = arith.constant 0 : i32
    %c0_i32_1 = arith.constant 0 : i32
    %c0_i32_2 = arith.constant 0 : i32
    return %c0_i32, %c0_i32_0, %c0_i32_1 : i32, i32, i32
  }
  func.func @transform_4(%arg0: i32) -> (i32, i32, i32) {
    %c0_i32 = arith.constant 0 : i32
    %c0_i32_0 = arith.constant 0 : i32
    %c0_i32_1 = arith.constant 0 : i32
    %c0_i32_2 = arith.constant 0 : i32
    return %c0_i32, %c0_i32_0, %c0_i32_1 : i32, i32, i32
  }
  func.func @transform_5(%arg0: i32) -> (i32, i32, i32) {
    %c0_i32 = arith.constant 0 : i32
    %c0_i32_0 = arith.constant 0 : i32
    %c0_i32_1 = arith.constant 0 : i32
    %c0_i32_2 = arith.constant 0 : i32
    return %c0_i32, %c0_i32_0, %c0_i32_1 : i32, i32, i32
  }
  func.func @transform_6(%arg0: i32) -> (i32, i32, i32) {
    %c0_i32 = arith.constant 0 : i32
    %c0_i32_0 = arith.constant 0 : i32
    %c0_i32_1 = arith.constant 0 : i32
    %c0_i32_2 = arith.constant 0 : i32
    return %c0_i32, %c0_i32_0, %c0_i32_1 : i32, i32, i32
  }
  func.func @transform_7(%arg0: i32) -> (i32, i32, i32) {
    %c0_i32 = arith.constant 0 : i32
    %c0_i32_0 = arith.constant 0 : i32
    %c0_i32_1 = arith.constant 0 : i32
    %c0_i32_2 = arith.constant 0 : i32
    return %c0_i32, %c0_i32_0, %c0_i32_1 : i32, i32, i32
  }
  func.func @transform_8(%arg0: i32) -> (i32, i32, i32) {
    %c0_i32 = arith.constant 0 : i32
    %c0_i32_0 = arith.constant 0 : i32
    %c0_i32_1 = arith.constant 0 : i32
    %c0_i32_2 = arith.constant 0 : i32
    return %c0_i32, %c0_i32_0, %c0_i32_1 : i32, i32, i32
  }
  func.func @transform_9(%arg0: i32) -> (i32, i32) {
    %c0_i32 = arith.constant 0 : i32
    %c0_i32_0 = arith.constant 0 : i32
    %c0_i32_1 = arith.constant 0 : i32
    return %c0_i32, %c0_i32_0 : i32, i32
  }
  func.func @transform_10(%arg0: i32) -> (i32, i32) {
    %c0_i32 = arith.constant 0 : i32
    %c0_i32_0 = arith.constant 0 : i32
    %c0_i32_1 = arith.constant 0 : i32
    return %c0_i32, %c0_i32_0 : i32, i32
  }
  func.func @transform_11(%arg0: i32) -> (i32, i32) {
    %c0_i32 = arith.constant 0 : i32
    %c0_i32_0 = arith.constant 0 : i32
    %c0_i32_1 = arith.constant 0 : i32
    return %c0_i32, %c0_i32_0 : i32, i32
  }
  func.func @transform_12(%arg0: i32) -> (i32, i32) {
    %c0_i32 = arith.constant 0 : i32
    %c0_i32_0 = arith.constant 0 : i32
    %c0_i32_1 = arith.constant 0 : i32
    return %c0_i32, %c0_i32_0 : i32, i32
  }
  func.func @transform_13(%arg0: i32) -> (i32, i32, i32) {
    %c0_i32 = arith.constant 0 : i32
    %c0_i32_0 = arith.constant 0 : i32
    %c0_i32_1 = arith.constant 0 : i32
    return %arg0, %c0_i32, %c0_i32_0 : i32, i32, i32
  }
}

module attributes {stable_mosaic.version = 11 : i64} {
  func.func @_ffn_add_ln_kernel(%arg0: i32, %arg1: memref<16x32xf32, #tpu.memory_space<vmem>>, %arg2: memref<32x64xf32, #tpu.memory_space<vmem>>, %arg3: memref<1x64xf32, #tpu.memory_space<vmem>>, %arg4: memref<64x32xf32, #tpu.memory_space<vmem>>, %arg5: memref<1x32xf32, #tpu.memory_space<vmem>>, %arg6: memref<1x32xf32, #tpu.memory_space<vmem>>, %arg7: memref<1x32xf32, #tpu.memory_space<vmem>>, %arg8: memref<16x32xf32, #tpu.memory_space<vmem>>) attributes {dimension_semantics = [#tpu.dimension_semantics<parallel>], iteration_bounds = array<i64: 1>, scalar_prefetch = 0 : i64, scratch_operands = 0 : i64, tpu.core_type = #tpu.core_type<tc>, window_params = [{transform_indices = @transform_0, window_bounds = array<i64: 16, 32>}, {pipeline_mode = #tpu.pipeline_mode<synchronous>, transform_indices = @transform_1, window_bounds = array<i64: 32, 64>}, {pipeline_mode = #tpu.pipeline_mode<synchronous>, transform_indices = @transform_2, window_bounds = array<i64: 1, 64>}, {pipeline_mode = #tpu.pipeline_mode<synchronous>, transform_indices = @transform_3, window_bounds = array<i64: 64, 32>}, {pipeline_mode = #tpu.pipeline_mode<synchronous>, transform_indices = @transform_4, window_bounds = array<i64: 1, 32>}, {pipeline_mode = #tpu.pipeline_mode<synchronous>, transform_indices = @transform_5, window_bounds = array<i64: 1, 32>}, {pipeline_mode = #tpu.pipeline_mode<synchronous>, transform_indices = @transform_6, window_bounds = array<i64: 1, 32>}, {transform_indices = @transform_7, window_bounds = array<i64: 16, 32>}]} {
    %c0 = arith.constant 0 : index
    %c0_0 = arith.constant 0 : index
    %0 = vector.load %arg1[%c0, %c0_0] : memref<16x32xf32, #tpu.memory_space<vmem>>, vector<16x32xf32>
    %c0_1 = arith.constant 0 : index
    %c0_2 = arith.constant 0 : index
    %1 = vector.load %arg2[%c0_1, %c0_2] : memref<32x64xf32, #tpu.memory_space<vmem>>, vector<32x64xf32>
    %cst = arith.constant dense<0.000000e+00> : vector<16x64xf32>
    %2 = tpu.matmul %0, %1, %cst {dimension_numbers = #tpu.dot_dimension_numbers<[1], [0], [0], [1], [0, 0, 1, 1], [], []>} : vector<16x32xf32>, vector<32x64xf32>, vector<16x64xf32> -> vector<16x64xf32>
    %c0_3 = arith.constant 0 : index
    %c0_4 = arith.constant 0 : index
    %3 = vector.load %arg3[%c0_3, %c0_4] : memref<1x64xf32, #tpu.memory_space<vmem>>, vector<1x64xf32>
    %4 = vector.broadcast %3 : vector<1x64xf32> to vector<16x64xf32>
    %5 = arith.addf %2, %4 : vector<16x64xf32>
    %cst_5 = arith.constant 0.000000e+00 : f32
    %6 = vector.broadcast %cst_5 : f32 to vector<16x64xf32>
    %7 = arith.maximumf %5, %6 : vector<16x64xf32>
    %c0_6 = arith.constant 0 : index
    %c0_7 = arith.constant 0 : index
    %8 = vector.load %arg4[%c0_6, %c0_7] : memref<64x32xf32, #tpu.memory_space<vmem>>, vector<64x32xf32>
    %cst_8 = arith.constant dense<0.000000e+00> : vector<16x32xf32>
    %9 = tpu.matmul %7, %8, %cst_8 {dimension_numbers = #tpu.dot_dimension_numbers<[1], [0], [0], [1], [0, 0, 1, 1], [], []>} : vector<16x64xf32>, vector<64x32xf32>, vector<16x32xf32> -> vector<16x32xf32>
    %c0_9 = arith.constant 0 : index
    %c0_10 = arith.constant 0 : index
    %10 = vector.load %arg5[%c0_9, %c0_10] : memref<1x32xf32, #tpu.memory_space<vmem>>, vector<1x32xf32>
    %11 = vector.broadcast %10 : vector<1x32xf32> to vector<16x32xf32>
    %12 = arith.addf %9, %11 : vector<16x32xf32>
    %c0_11 = arith.constant 0 : index
    %c0_12 = arith.constant 0 : index
    %13 = vector.load %arg6[%c0_11, %c0_12] : memref<1x32xf32, #tpu.memory_space<vmem>>, vector<1x32xf32>
    %c0_13 = arith.constant 0 : index
    %c0_14 = arith.constant 0 : index
    %14 = vector.load %arg7[%c0_13, %c0_14] : memref<1x32xf32, #tpu.memory_space<vmem>>, vector<1x32xf32>
    %15 = arith.addf %12, %0 : vector<16x32xf32>
    %cst_15 = arith.constant dense<0.000000e+00> : vector<16xf32>
    %16 = vector.multi_reduction <add>, %15, %cst_15 [1] : vector<16x32xf32> to vector<16xf32>
    %17 = vector.shape_cast %16 : vector<16xf32> to vector<16x1xf32>
    %cst_16 = arith.constant 3.200000e+01 : f32
    %18 = vector.broadcast %cst_16 : f32 to vector<16x1xf32>
    %19 = arith.divf %17, %18 : vector<16x1xf32>
    %20 = vector.broadcast %19 : vector<16x1xf32> to vector<16x32xf32>
    %21 = arith.subf %15, %20 : vector<16x32xf32>
    %22 = arith.mulf %21, %21 : vector<16x32xf32>
    %cst_17 = arith.constant dense<0.000000e+00> : vector<16xf32>
    %23 = vector.multi_reduction <add>, %22, %cst_17 [1] : vector<16x32xf32> to vector<16xf32>
    %24 = vector.shape_cast %23 : vector<16xf32> to vector<16x1xf32>
    %cst_18 = arith.constant 3.200000e+01 : f32
    %25 = vector.broadcast %cst_18 : f32 to vector<16x1xf32>
    %26 = arith.divf %24, %25 : vector<16x1xf32>
    %27 = vector.broadcast %19 : vector<16x1xf32> to vector<16x32xf32>
    %28 = arith.subf %15, %27 : vector<16x32xf32>
    %cst_19 = arith.constant 9.99999974E-6 : f32
    %29 = vector.broadcast %cst_19 : f32 to vector<16x1xf32>
    %30 = arith.addf %26, %29 : vector<16x1xf32>
    %31 = math.rsqrt %30 : vector<16x1xf32>
    %32 = vector.broadcast %31 : vector<16x1xf32> to vector<16x32xf32>
    %33 = arith.mulf %28, %32 : vector<16x32xf32>
    %34 = vector.broadcast %13 : vector<1x32xf32> to vector<16x32xf32>
    %35 = arith.mulf %33, %34 : vector<16x32xf32>
    %36 = vector.broadcast %14 : vector<1x32xf32> to vector<16x32xf32>
    %37 = arith.addf %35, %36 : vector<16x32xf32>
    %c0_20 = arith.constant 0 : index
    %c0_21 = arith.constant 0 : index
    %38 = vector.load %arg8[%c0_20, %c0_21] : memref<16x32xf32, #tpu.memory_space<vmem>>, vector<16x32xf32>
    tpu.vector_store %arg8[%c0_20, %c0_21], %37 {strides = array<i32>} : memref<16x32xf32, #tpu.memory_space<vmem>>, vector<16x32xf32>,
    return
  }
  func.func @transform_0(%arg0: i32) -> (i32, i32) {
    %c0_i32 = arith.constant 0 : i32
    %c0_i32_0 = arith.constant 0 : i32
    return %arg0, %c0_i32 : i32, i32
  }
  func.func @transform_1(%arg0: i32) -> (i32, i32) {
    %c0_i32 = arith.constant 0 : i32
    %c0_i32_0 = arith.constant 0 : i32
    %c0_i32_1 = arith.constant 0 : i32
    return %c0_i32, %c0_i32_0 : i32, i32
  }
  func.func @transform_2(%arg0: i32) -> (i32, i32) {
    %c0_i32 = arith.constant 0 : i32
    %c0_i32_0 = arith.constant 0 : i32
    %c0_i32_1 = arith.constant 0 : i32
    return %c0_i32, %c0_i32_0 : i32, i32
  }
  func.func @transform_3(%arg0: i32) -> (i32, i32) {
    %c0_i32 = arith.constant 0 : i32
    %c0_i32_0 = arith.constant 0 : i32
    %c0_i32_1 = arith.constant 0 : i32
    return %c0_i32, %c0_i32_0 : i32, i32
  }
  func.func @transform_4(%arg0: i32) -> (i32, i32) {
    %c0_i32 = arith.constant 0 : i32
    %c0_i32_0 = arith.constant 0 : i32
    %c0_i32_1 = arith.constant 0 : i32
    return %c0_i32, %c0_i32_0 : i32, i32
  }
  func.func @transform_5(%arg0: i32) -> (i32, i32) {
    %c0_i32 = arith.constant 0 : i32
    %c0_i32_0 = arith.constant 0 : i32
    %c0_i32_1 = arith.constant 0 : i32
    return %c0_i32, %c0_i32_0 : i32, i32
  }
  func.func @transform_6(%arg0: i32) -> (i32, i32) {
    %c0_i32 = arith.constant 0 : i32
    %c0_i32_0 = arith.constant 0 : i32
    %c0_i32_1 = arith.constant 0 : i32
    return %c0_i32, %c0_i32_0 : i32, i32
  }
  func.func @transform_7(%arg0: i32) -> (i32, i32) {
    %c0_i32 = arith.constant 0 : i32
    %c0_i32_0 = arith.constant 0 : i32
    return %arg0, %c0_i32 : i32, i32
  }
}

</mosaic_0001>

<bundles_post_ra>
// kernel: decoder_layer.5
= control target key start
LH: loop header
LB: loop body
LE: loop exit
PB: predicated region body
PF: predicated region fallthrough
CT: control target
= control target key end

     0   :  { %vm40_vm0 = vcmask 261120   ;;  %s477_s0 = inlined_call_operand.vmem [shape: f32[16,32], index: 0, kind: input, shape index: {}]   ;;  %s478_s1 = inlined_call_operand.vmem [shape: f32[32,64], index: 1, kind: input, shape index: {}]   ;;  %s479_s2 = inlined_call_operand.vmem [shape: f32[1,64], index: 2, kind: input, shape index: {}]   ;;  %s480_s3 = inlined_call_operand.vmem [shape: f32[64,32], index: 3, kind: input, shape index: {}]   ;;  %s481_s4 = inlined_call_operand.vmem [shape: f32[1,32], index: 4, kind: input, shape index: {}]   ;;  %s482_s5 = inlined_call_operand.vmem [shape: f32[1,32], index: 5, kind: input, shape index: {}]   ;;  %s483_s6 = inlined_call_operand.vmem [shape: f32[1,32], index: 6, kind: input, shape index: {}]   ;;  %s484_s7 = inlined_call_operand.hbm [shape: f32[16,32], index: 7, kind: output, shape index: {}]  }
   0x1   :  { %v32_v0 = vld [vmem:[%s478_s1 + $0x18] sm:$0xff]  ;;  %v31_v1 = vld [vmem:[%s478_s1 + $0x10] sm:$0xff]  ;;  %v27_v2 = vld [vmem:[%s477_s0] sm:$0xff] }
   0x2   :  { %310 = vmatprep.subr.mxu0 %v32_v0  ;;  %v30_v3 = vld [vmem:[%s478_s1 + $0x8] sm:$0xff]  ;;  %318 = vmatprep.mubr.msk.f32.mxu0 %vm40_vm0, %v27_v2  ;;  %v131_v4 = vld [vmem:[%s480_s3 + $0x38] sm:$0xff]  ;;  %v130_v5 = vld [vmem:[%s480_s3 + $0x30] sm:$0xff] }
   0x3   :  { %311 = vmatpush3.msra.mxu0 %v32_v0  ;;  %321 = vmatprep.subr.mxu1 %v131_v4 }
   0x4   :  { %312 = vmatprep.subr.mxu0 %v31_v1 }
   0x5   :  { %12 = vsyncpa [#allocation3], 0  ;;  %313 = vmatpush3.msra.mxu0 %v31_v1  ;;  %v29_v6 = vld [vmem:[%s478_s1] sm:$0xff]  ;;  %322 = vmatpush3.msra.mxu1 %v131_v4  ;;  %v129_v7 = vld [vmem:[%s480_s3 + $0x28] sm:$0xff]  ;;  %vm139_vm1 = vcmask 523264   ;;  %s369_s9 = smov [#allocation2]  }
   0x6   :  { %314 = vmatprep.subr.mxu0 %v30_v3  ;;  %323 = vmatprep.subr.mxu1 %v130_v5  ;;  %v28_v8 = vld [vmem:[%s477_s0 + $0x8] sm:$0xff]  ;;  %v128_v9 = vld [vmem:[%s480_s3 + $0x20] sm:$0xff]  ;;  %v127_v10 = vld [vmem:[%s480_s3 + $0x18] sm:$0xff]  ;;  %s275_s10 = sshll.u32 %s369_s9, 4  ;;  %s276_s10 = int_to_ptr.vmem [resolvable:$true] %s275_s10 }
   0x7   :  { %315 = vmatpush3.msra.mxu0 %v30_v3  ;;  %324 = vmatpush3.msra.mxu1 %v130_v5  ;;  %v126_v11 = vld [vmem:[%s480_s3 + $0x10] sm:$0xff]  ;;  %v125_v12 = vld [vmem:[%s480_s3 + $0x8] sm:$0xff]  ;;  %v124_v13 = vld [vmem:[%s480_s3] sm:$0xff]  ;;  %s347_s11 = scalar_lea.vmem %s276_s10, 256  ;;  %p352_p1 = scmp.lt.s32.totalorder %s276_s10, %s276_s10 }
   0x8   :  { %316 = vmatprep.subr.mxu0 %v29_v6  ;;  %325 = vmatprep.subr.mxu1 %v129_v7  ;;  %v286_v14 = vld [vmem:[%s479_s2] ss:$0 sm:$0xff]  ;;  %p348_p0 = scmp.ne.s32.totalorder %s276_s10, %s347_s11  ;;  %p353_p2 = scmp.lt.s32.totalorder %s347_s11, %s347_s11 }
   0x9   :  { %317 = vmatpush3.msra.mxu0 %v29_v6  ;;  %326 = vmatpush3.msra.mxu1 %v129_v7  ;;  %v289_v22 = vld [vmem:[%s481_s4] ss:$0 sm:$0xff] }
   0xa   :  { %319 = vmatmul.mubr.msk.f32.vlgmr.msra.gmra.mxu0 %vm40_vm0, %v28_v8  ;;  %327 = vmatprep.subr.mxu1 %v128_v9  ;;  %v292_v47 = vld [vmem:[%s482_s5] ss:$0 sm:$0xff]  ;;  %p354_p3 = por %p353_p2, %p352_p1 }
   0xb   :  { %328 = vmatpush3.msra.mxu1 %v128_v9  ;;  %v293_v49 = vld [vmem:[%s483_s6] ss:$0 sm:$0xff] }
   0xc   :  { %329 = vmatprep.subr.mxu1 %v127_v10  ;;  %p355_p4 = pnand %p354_p3, %p348_p0 }
   0xd   :  { %330 = vmatpush3.msra.mxu1 %v127_v10 }
   0xe   :  { %331 = vmatprep.subr.mxu1 %v126_v11 }
   0xf   :  { %332 = vmatpush3.msra.mxu1 %v126_v11 }
  0x10   :  { %333 = vmatprep.subr.mxu1 %v125_v12 }
  0x11   :  { %334 = vmatpush3.msra.mxu1 %v125_v12 }
  0x12   :  { %335 = vmatprep.subr.mxu1 %v124_v13 }
  0x13   :  { %336 = vmatpush3.msra.mxu1 %v124_v13 }
  0xca   :  { %v320_v15 = vpop.f32.mrf.mxu0 }
  0xcb   :  { %v119_v16 = vadd.f32 %v320_v15, %v286_v14 }
  0xcc   :  { %v113_v17 = vpop.f32.mrf.mxu0 }
  0xcd   :  { %v114_v18 = vadd.f32 %v286_v14, %v113_v17  ;;  %v123_v20 = vmax.f32 %v119_v16, 0.0 }
  0xcf   :  { %v122_v19 = vmax.f32 %v114_v18, 0.0 }
  0xd1   :  { %337 = vmatprep.mubr.msk.f32.mxu1 %vm139_vm1, %v122_v19 }
  0xd2   :  { %338 = vmatmul.mubr.msk.f32.vlgmr.msra.gmra.mxu1 %vm139_vm1, %v123_v20 }
 0x192   :  { %v339_v21 = vpop.f32.mrf.mxu1 }
 0x193   :  { %v218_v24 = vadd.f32 %v339_v21, %v289_v22 }
 0x194   :  { %v212_v23 = vpop.f32.mrf.mxu1 }
 0x195   :  { %v213_v25 = vadd.f32 %v289_v22, %v212_v23  ;;  %v224_v28 = vadd.f32 %v218_v24, %v28_v8 }
 0x197   :  { %v223_v26 = vadd.f32 %v213_v25, %v27_v2  ;;  %v228_v29 = vsel %vm40_vm0, %v224_v28, 0.0 }
 0x199   :  { %v225_v27 = vsel %vm40_vm0, %v223_v26, 0.0 }
 0x19a   :  { %226 = vadd.xlane.f32.xlu0 %v225_v27 }
 0x19e   :  { %229 = vadd.xlane.f32.xlu0 %v228_v29 }
 0x223   :  { %v227_v30 = vpop.xlane.xlu0 %226 }
 0x224   :  { %v232_v31 = vmul.f32 0.03125, %v227_v30 }
 0x226   :  { %v234_v32 = vsub.f32 %v223_v26, %v232_v31 }
 0x227   :  { %v230_v33 = vpop.xlane.xlu0 %229 }
 0x228   :  { %v233_v34 = vmul.f32 0.03125, %v230_v33  ;;  %v236_v35 = vmul.f32 %v234_v32, %v234_v32 }
 0x22a   :  { %v235_v36 = vsub.f32 %v224_v28, %v233_v34  ;;  %v238_v37 = vsel %vm40_vm0, %v236_v35, 0.0 }
 0x22b   :  { %239 = vadd.xlane.f32.xlu1 %v238_v37 }
 0x22c   :  { %v237_v38 = vmul.f32 %v235_v36, %v235_v36 }
 0x22e   :  { %v241_v39 = vsel %vm40_vm0, %v237_v38, 0.0 }
 0x22f   :  { %242 = vadd.xlane.f32.xlu1 %v241_v39 }
 0x2b4   :  { %v240_v40 = vpop.xlane.xlu1 %239 }
 0x2b5   :  { %v244_v41 = vmul.f32 0.03125, %v240_v40 }
 0x2b7   :  { %v246_v42 = vadd.f32 1e-05, %v244_v41 }
 0x2b8   :  { %v243_v43 = vpop.xlane.xlu1 %242 }
 0x2b9   :  { %343 = vrsqrt.f32 %v246_v42  ;;  %v245_v44 = vmul.f32 0.03125, %v243_v43 }
 0x2bb   :  { %v247_v45 = vadd.f32 1e-05, %v245_v44 }
 0x2bd   :  { %345 = vrsqrt.f32 %v247_v45 }
 0x2c6   :  { %v344_v46 = vpop.eup %343 }
 0x2c7   :  { %v250_v48 = vmul.f32 %v344_v46, %v234_v32 }
 0x2c9   :  { %v258_v50 = vmul.f32 %v292_v47, %v250_v48 }
 0x2ca   :  { %v346_v51 = vpop.eup %345 }
 0x2cb   :  { %v251_v52 = vmul.f32 %v346_v51, %v235_v36  ;;  %v266_v53 = vadd.f32 %v293_v49, %v258_v50 }
 0x2cd   :  { %v259_v54 = vmul.f32 %v292_v47, %v251_v52  ;;  %268 = vst.msk [vmem:[#allocation2] sm:$0xff] %vm40_vm0, %v266_v53 }
 0x2cf   :  { %v267_v55 = vadd.f32 %v293_v49, %v259_v54 }
 0x2d1   :  { %269 = vst.msk [vmem:[#allocation2 + $0x8] sm:$0xff] %vm40_vm0, %v267_v55 }
 0x2d2   :  { %358 = shalt.err (!%p355_p4)
}
 0x2d3   :  { %s370_s5 = smov 128   ;;  %s371_s6 = smov 8  }
 0x2d4   :  { %281 = dma.vmem_to_hbm [thread:$0]  %s276_s10, 256, %s484_s7, [#allocation3], %s370_s5, %s370_s5, %s371_s6  }
 0x2d5   :  { %367 = dma.done.wait [#allocation3], 256  }
 0x2d6   :  { %368 = vsyncadd [#allocation3], 4294967040 }
 0x2d7   :  { %285 = vsyncpa [#allocation3], 1 }

// kernel: decoder_layer.3
= control target key start
LH: loop header
LB: loop body
LE: loop exit
PB: predicated region body
PF: predicated region fallthrough
CT: control target
= control target key end

     0   :  { %s2925_s25 = smov 0   ;;  %s3322_s0 = inlined_call_operand.vmem [shape: f32[2,8,32], index: 0, kind: input, shape index: {}, may-alias: {0,1}]   ;;  %s3323_s1 = inlined_call_operand.vmem [shape: f32[2,8,32], index: 1, kind: input, shape index: {}, may-alias: {0,1}]   ;;  %s3324_s2 = inlined_call_operand.vmem [shape: f32[4,32,8], index: 2, kind: input, shape index: {}]   ;;  %s3325_s3 = inlined_call_operand.vmem [shape: f32[4,1,8], index: 3, kind: input, shape index: {}]   ;;  %s3326_s4 = inlined_call_operand.vmem [shape: f32[4,32,8], index: 4, kind: input, shape index: {}]   ;;  %s3327_s5 = inlined_call_operand.vmem [shape: f32[4,1,8], index: 5, kind: input, shape index: {}]   ;;  %s3328_s6 = inlined_call_operand.vmem [shape: f32[4,32,8], index: 6, kind: input, shape index: {}]   ;;  %s3329_s7 = inlined_call_operand.vmem [shape: f32[4,1,8], index: 7, kind: input, shape index: {}]   ;;  %s3330_s8 = inlined_call_operand.vmem [shape: f32[4,8,32], index: 8, kind: input, shape index: {}]   ;;  %s3331_s9 = inlined_call_operand.vmem [shape: f32[1,32], index: 9, kind: input, shape index: {}]   ;;  %s3332_s10 = inlined_call_operand.vmem [shape: f32[8,8], index: 10, kind: input, shape index: {}]   ;;  %s3333_s11 = inlined_call_operand.vmem [shape: f32[1,32], index: 11, kind: input, shape index: {}]   ;;  %s3334_s12 = inlined_call_operand.vmem [shape: f32[1,32], index: 12, kind: input, shape index: {}]   ;;  %s3335_s13 = inlined_call_operand.vmem [shape: f32[2,8,32], index: 13, kind: output, shape index: {}]  }
   0x1 LB: > { %s2488_s26 = sadd.s32 4294967295, %s2851_s25   ;;  %p2492_p0 = scmp.ge.s32.totalorder %s2851_s25, 1  ;;  %s2851_s25 = sphi %s2925_s25, %s23_s25  }
   0x2   : > { %p395_p1 = scmp.lt.s32.totalorder %s2851_s25, 3 }
   0x4   : > { %p396_p2 = pnand %p2492_p0, %p395_p1 }
   0x5   : > { %p441_p3 = scmp.lt.s32.totalorder (!%p396_p2), %s2488_s26, 1 }
   0x6   : > { %399 = sbr.rel (%p396_p2) target bundleno = 1309 (0x51d), region = 72 }
   0xb   : > { %v458_v0 = vld [vmem:[%s3324_s2 + $0x18] sm:$0xff]  ;;  %v2853_v2 = vmov 0.0   ;;  %v457_v3 = vld [vmem:[%s3324_s2 + $0x10] sm:$0xff]  ;;  %s3337_s26 = smov (!%p441_p3, %s2488_s26), 1  ;;  %v456_v5 = vld [vmem:[%s3324_s2 + $0x8] sm:$0xff]  ;;  %vm499_vm0 = vcmask 261120  }
   0xc   : > { %v462_v1 = vld [vmem:[%s3324_s2 + $0x38] sm:$0xff]  ;;  %2625 = vmatprep.subr.mxu0 %v2853_v2  ;;  %2636 = vmatprep.subr.mxu1 %v2853_v2  ;;  %v461_v4 = vld [vmem:[%s3324_s2 + $0x30] sm:$0xff]  ;;  %v460_v6 = vld [vmem:[%s3324_s2 + $0x28] sm:$0xff]  ;;  %s2955_s22 = sshll.u32 %s3337_s26, 3  ;;  %vm2854_vm1 = vmmov 0   ;;  %vm1439_vm2 = vcmask 64512  }
   0xd   : > { %2626 = vmatpush3.msra.mxu0 %v458_v0  ;;  %2637 = vmatpush3.msra.mxu1 %v462_v1  ;;  %v455_v7 = vld [vmem:[%s3324_s2] sm:$0xff]  ;;  %s444_s29 = scalar_lea.vmem %s3322_s0, %s2955_s22  ;;  %v466_v10 = vld [vmem:[%s3324_s2 + $0x58] sm:$0xff]  ;;  %v465_v12 = vld [vmem:[%s3324_s2 + $0x50] sm:$0xff]  ;;  %s448_s26 = scalar_lea.vmem %s3323_s1, %s2955_s22 }
   0xe   : > { %2627 = vmatprep.subr.mxu0 %v2853_v2  ;;  %2638 = vmatprep.subr.mxu1 %v2853_v2  ;;  %v459_v8 = vld [vmem:[%s3324_s2 + $0x20] sm:$0xff]  ;;  %v470_v11 = vld [vmem:[%s3324_s2 + $0x78] sm:$0xff]  ;;  %v469_v13 = vld [vmem:[%s3324_s2 + $0x70] sm:$0xff]  ;;  %s452_s19 = scalar_lea.vmem %s3335_s13, %s2955_s22 }
   0xf   : > { %2628 = vmatpush3.msra.mxu0 %v457_v3  ;;  %2639 = vmatpush3.msra.mxu1 %v461_v4  ;;  %v2969_v9 = vld [vmem:[%s444_s29] sm:$0xff]  ;;  %v464_v14 = vld [vmem:[%s3324_s2 + $0x48] sm:$0xff]  ;;  %v790_v18 = vld [vmem:[%s3326_s4 + $0x18] sm:$0xff] }
  0x10   : > { %2629 = vmatprep.subr.mxu0 %v2853_v2  ;;  %2640 = vmatprep.subr.mxu1 %v2853_v2  ;;  %v468_v15 = vld [vmem:[%s3324_s2 + $0x68] sm:$0xff]  ;;  %v463_v16 = vld [vmem:[%s3324_s2 + $0x40] sm:$0xff]  ;;  %v794_v19 = vld [vmem:[%s3326_s4 + $0x38] sm:$0xff] }
  0x11   : > { %2630 = vmatpush3.msra.mxu0 %v456_v5  ;;  %2641 = vmatpush3.msra.mxu1 %v460_v6  ;;  %v467_v17 = vld [vmem:[%s3324_s2 + $0x60] sm:$0xff]  ;;  %v789_v20 = vld [vmem:[%s3326_s4 + $0x10] sm:$0xff]  ;;  %v788_v22 = vld [vmem:[%s3326_s4 + $0x8] sm:$0xff] }
  0x12   : > { %2631 = vmatprep.subr.mxu0 %v2853_v2  ;;  %2642 = vmatprep.subr.mxu1 %v2853_v2  ;;  %v793_v21 = vld [vmem:[%s3326_s4 + $0x30] sm:$0xff]  ;;  %v792_v23 = vld [vmem:[%s3326_s4 + $0x28] sm:$0xff]  ;;  %v787_v24 = vld [vmem:[%s3326_s4] sm:$0xff] }
  0x13   : > { %2632 = vmatpush3.msra.mxu0 %v455_v7  ;;  %2633 = vmatprep.mubr.msk.f32.mxu0 %vm2854_vm1, %v2853_v2  ;;  %v791_v25 = vld [vmem:[%s3326_s4 + $0x20] sm:$0xff]  ;;  %v798_v27 = vld [vmem:[%s3326_s4 + $0x58] sm:$0xff]  ;;  %v797_v29 = vld [vmem:[%s3326_s4 + $0x50] sm:$0xff] }
  0x14   : > { %2643 = vmatpush3.msra.mxu1 %v459_v8  ;;  %2634 = vmatmul.mubr.msk.f32.vlgmr.msra.gmra.mxu0 %vm499_vm0, %v2969_v9  ;;  %v3055_v26 = vld [vmem:[%s448_s26] sm:$0xff]  ;;  %v802_v28 = vld [vmem:[%s3326_s4 + $0x78] sm:$0xff]  ;;  %v801_v30 = vld [vmem:[%s3326_s4 + $0x70] sm:$0xff] }
  0x15   : > { %2644 = vmatprep.mubr.msk.f32.mxu1 %vm2854_vm1, %v2853_v2  ;;  %2647 = vmatprep.subr.mxu0 %v2853_v2  ;;  %v796_v31 = vld [vmem:[%s3326_s4 + $0x48] sm:$0xff]  ;;  %v795_v33 = vld [vmem:[%s3326_s4 + $0x40] sm:$0xff]  ;;  %v1117_v35 = vld [vmem:[%s3328_s6 + $0x18] sm:$0xff] }
  0x16   : > { %2658 = vmatprep.subr.mxu1 %v2853_v2  ;;  %2645 = vmatmul.mubr.msk.f32.vlgmr.msra.gmra.mxu1 %vm499_vm0, %v2969_v9  ;;  %v800_v32 = vld [vmem:[%s3326_s4 + $0x68] sm:$0xff]  ;;  %v799_v34 = vld [vmem:[%s3326_s4 + $0x60] sm:$0xff]  ;;  %v1121_v36 = vld [vmem:[%s3328_s6 + $0x38] sm:$0xff] }
  0x17   : > { %2648 = vmatpush3.msra.mxu0 %v466_v10  ;;  %2659 = vmatpush3.msra.mxu1 %v470_v11  ;;  %v1116_v37 = vld [vmem:[%s3328_s6 + $0x10] sm:$0xff]  ;;  %v1115_v39 = vld [vmem:[%s3328_s6 + $0x8] sm:$0xff]  ;;  %v1114_v41 = vld [vmem:[%s3328_s6] sm:$0xff] }
  0x18   : > { %2649 = vmatprep.subr.mxu0 %v2853_v2  ;;  %2660 = vmatprep.subr.mxu1 %v2853_v2  ;;  %v1120_v38 = vld [vmem:[%s3328_s6 + $0x30] sm:$0xff]  ;;  %v1119_v40 = vld [vmem:[%s3328_s6 + $0x28] sm:$0xff]  ;;  %v1118_v42 = vld [vmem:[%s3328_s6 + $0x20] sm:$0xff] }
  0x19   : > { %2650 = vmatpush3.msra.mxu0 %v465_v12  ;;  %2661 = vmatpush3.msra.mxu1 %v469_v13  ;;  %v1125_v43 = vld [vmem:[%s3328_s6 + $0x58] sm:$0xff]  ;;  %v1124_v45 = vld [vmem:[%s3328_s6 + $0x50] sm:$0xff]  ;;  %v1123_v47 = vld [vmem:[%s3328_s6 + $0x48] sm:$0xff] }
  0x1a   : > { %2651 = vmatprep.subr.mxu0 %v2853_v2  ;;  %2662 = vmatprep.subr.mxu1 %v2853_v2  ;;  %v1129_v44 = vld [vmem:[%s3328_s6 + $0x78] sm:$0xff]  ;;  %v1128_v46 = vld [vmem:[%s3328_s6 + $0x70] sm:$0xff]  ;;  %v1127_v48 = vld [vmem:[%s3328_s6 + $0x68] sm:$0xff] }
  0x1b   : > { %2652 = vmatpush3.msra.mxu0 %v464_v14  ;;  %2663 = vmatpush3.msra.mxu1 %v468_v15  ;;  %v1122_v49 = vld [vmem:[%s3328_s6 + $0x40] sm:$0xff] }
  0x1c   : > { %2653 = vmatprep.subr.mxu0 %v2853_v2  ;;  %2664 = vmatprep.subr.mxu1 %v2853_v2  ;;  %v1126_v50 = vld [vmem:[%s3328_s6 + $0x60] sm:$0xff] }
  0x1d   : > { %2654 = vmatpush3.msra.mxu0 %v463_v16  ;;  %2655 = vmatprep.mubr.msk.f32.mxu0 %vm2854_vm1, %v2853_v2  ;;  %v2496_v59 = vld [vmem:[%s3325_s3] ss:$0 sm:$0xff]  ;;  %v2497_v60 = vld [vmem:[%s3325_s3 + $0x1] ss:$0 sm:$0xff]  ;;  %v2498_v11 = vld [vmem:[%s3325_s3 + $0x2] ss:$0 sm:$0xff] }
  0x1e   : > { %2665 = vmatpush3.msra.mxu1 %v467_v17  ;;  %2656 = vmatmul.mubr.msk.f32.vlgmr.msra.gmra.mxu0 %vm499_vm0, %v2969_v9  ;;  %v2504_v61 = vld [vmem:[%s3327_s5] ss:$0 sm:$0xff]  ;;  %v2505_v62 = vld [vmem:[%s3327_s5 + $0x1] ss:$0 sm:$0xff]  ;;  %v2499_v12 = vld [vmem:[%s3325_s3 + $0x3] ss:$0 sm:$0xff] }
  0x1f   : > { %2666 = vmatprep.mubr.msk.f32.mxu1 %vm2854_vm1, %v2853_v2  ;;  %2669 = vmatprep.subr.mxu0 %v2853_v2  ;;  %v2506_v13 = vld [vmem:[%s3327_s5 + $0x2] ss:$0 sm:$0xff]  ;;  %v2507_v14 = vld [vmem:[%s3327_s5 + $0x3] ss:$0 sm:$0xff] }
  0x20   : > { %2680 = vmatprep.subr.mxu1 %v2853_v2  ;;  %2667 = vmatmul.mubr.msk.f32.vlgmr.msra.gmra.mxu1 %vm499_vm0, %v2969_v9 }
  0x21   : > { %2670 = vmatpush3.msra.mxu0 %v790_v18  ;;  %2681 = vmatpush3.msra.mxu1 %v794_v19 }
  0x22   : > { %2671 = vmatprep.subr.mxu0 %v2853_v2  ;;  %2682 = vmatprep.subr.mxu1 %v2853_v2 }
  0x23   : > { %2672 = vmatpush3.msra.mxu0 %v789_v20  ;;  %2683 = vmatpush3.msra.mxu1 %v793_v21 }
  0x24   : > { %2673 = vmatprep.subr.mxu0 %v2853_v2  ;;  %2684 = vmatprep.subr.mxu1 %v2853_v2 }
  0x25   : > { %2674 = vmatpush3.msra.mxu0 %v788_v22  ;;  %2685 = vmatpush3.msra.mxu1 %v792_v23 }
  0x26   : > { %2675 = vmatprep.subr.mxu0 %v2853_v2  ;;  %2686 = vmatprep.subr.mxu1 %v2853_v2 }
  0x27   : > { %2676 = vmatpush3.msra.mxu0 %v787_v24  ;;  %2677 = vmatprep.mubr.msk.f32.mxu0 %vm2854_vm1, %v2853_v2 }
  0x28   : > { %2687 = vmatpush3.msra.mxu1 %v791_v25  ;;  %2688 = vmatprep.mubr.msk.f32.mxu1 %vm2854_vm1, %v2853_v2  ;;  %v2512_v25 = vld [vmem:[%s3329_s7] ss:$0 sm:$0xff] }
  0x29   : > { %2678 = vmatmul.mubr.msk.f32.vlgmr.msra.gmra.mxu0 %vm499_vm0, %v3055_v26  ;;  %2689 = vmatmul.mubr.msk.f32.vlgmr.msra.gmra.mxu1 %vm499_vm0, %v3055_v26 }
  0x2a   : > { %2691 = vmatprep.subr.mxu0 %v2853_v2  ;;  %2702 = vmatprep.subr.mxu1 %v2853_v2 }
  0x2b   : > { %2692 = vmatpush3.msra.mxu0 %v798_v27  ;;  %2703 = vmatpush3.msra.mxu1 %v802_v28 }
  0x2c   : > { %2693 = vmatprep.subr.mxu0 %v2853_v2  ;;  %2704 = vmatprep.subr.mxu1 %v2853_v2 }
  0x2d   : > { %2694 = vmatpush3.msra.mxu0 %v797_v29  ;;  %2705 = vmatpush3.msra.mxu1 %v801_v30 }
  0x2e   : > { %2695 = vmatprep.subr.mxu0 %v2853_v2  ;;  %2706 = vmatprep.subr.mxu1 %v2853_v2 }
  0x2f   : > { %2696 = vmatpush3.msra.mxu0 %v796_v31  ;;  %2707 = vmatpush3.msra.mxu1 %v800_v32 }
  0x30   : > { %2697 = vmatprep.subr.mxu0 %v2853_v2  ;;  %2708 = vmatprep.subr.mxu1 %v2853_v2 }
  0x31   : > { %2698 = vmatpush3.msra.mxu0 %v795_v33  ;;  %2699 = vmatprep.mubr.msk.f32.mxu0 %vm2854_vm1, %v2853_v2 }
  0x32   : > { %2709 = vmatpush3.msra.mxu1 %v799_v34  ;;  %2710 = vmatprep.mubr.msk.f32.mxu1 %vm2854_vm1, %v2853_v2 }
  0x33   : > { %2700 = vmatmul.mubr.msk.f32.vlgmr.msra.gmra.mxu0 %vm499_vm0, %v3055_v26  ;;  %2711 = vmatmul.mubr.msk.f32.vlgmr.msra.gmra.mxu1 %vm499_vm0, %v3055_v26 }
  0x34   : > { %2713 = vmatprep.subr.mxu0 %v2853_v2  ;;  %2724 = vmatprep.subr.mxu1 %v2853_v2 }
  0x35   : > { %2721 = vmatprep.mubr.msk.f32.mxu0 %vm2854_vm1, %v2853_v2  ;;  %2732 = vmatprep.mubr.msk.f32.mxu1 %vm2854_vm1, %v2853_v2 }
  0x36   : > { %2714 = vmatpush3.msra.mxu0 %v1117_v35  ;;  %2725 = vmatpush3.msra.mxu1 %v1121_v36 }
  0x37   : > { %2715 = vmatprep.subr.mxu0 %v2853_v2  ;;  %2726 = vmatprep.subr.mxu1 %v2853_v2 }
  0x38   : > { %2716 = vmatpush3.msra.mxu0 %v1116_v37  ;;  %2727 = vmatpush3.msra.mxu1 %v1120_v38  ;;  %v1438_v37 = vld [vmem:[%s3332_s10] sm:$0xff] }
  0x39   : > { %2717 = vmatprep.subr.mxu0 %v2853_v2  ;;  %2728 = vmatprep.subr.mxu1 %v2853_v2 }
  0x3a   : > { %2718 = vmatpush3.msra.mxu0 %v1115_v39  ;;  %2729 = vmatpush3.msra.mxu1 %v1119_v40 }
  0x3b   : > { %2719 = vmatprep.subr.mxu0 %v2853_v2  ;;  %2730 = vmatprep.subr.mxu1 %v2853_v2 }
  0x3c   : > { %2720 = vmatpush3.msra.mxu0 %v1114_v41  ;;  %2731 = vmatpush3.msra.mxu1 %v1118_v42 }
  0x3d   : > { %2735 = vmatprep.subr.mxu0 %v2853_v2  ;;  %2746 = vmatprep.subr.mxu1 %v2853_v2 }
  0x3e   : > { %2722 = vmatmul.mubr.msk.f32.vlgmr.msra.gmra.mxu0 %vm499_vm0, %v3055_v26  ;;  %2733 = vmatmul.mubr.msk.f32.vlgmr.msra.gmra.mxu1 %vm499_vm0, %v3055_v26 }
  0x3f   : > { %2736 = vmatpush3.msra.mxu0 %v1125_v43  ;;  %2747 = vmatpush3.msra.mxu1 %v1129_v44 }
  0x40   : > { %2737 = vmatprep.subr.mxu0 %v2853_v2  ;;  %2748 = vmatprep.subr.mxu1 %v2853_v2 }
  0x41   : > { %2738 = vmatpush3.msra.mxu0 %v1124_v45  ;;  %2749 = vmatpush3.msra.mxu1 %v1128_v46 }
  0x42   : > { %2739 = vmatprep.subr.mxu0 %v2853_v2  ;;  %2750 = vmatprep.subr.mxu1 %v2853_v2 }
  0x43   : > { %2740 = vmatpush3.msra.mxu0 %v1123_v47  ;;  %2751 = vmatpush3.msra.mxu1 %v1127_v48 }
  0x44   : > { %2741 = vmatprep.subr.mxu0 %v2853_v2  ;;  %2752 = vmatprep.subr.mxu1 %v2853_v2 }
  0x45   : > { %2742 = vmatpush3.msra.mxu0 %v1122_v49  ;;  %2743 = vmatprep.mubr.msk.f32.mxu0 %vm2854_vm1, %v2853_v2 }
  0x46   : > { %2753 = vmatpush3.msra.mxu1 %v1126_v50  ;;  %2754 = vmatprep.mubr.msk.f32.mxu1 %vm2854_vm1, %v2853_v2 }
  0x47   : > { %2744 = vmatmul.mubr.msk.f32.vlgmr.msra.gmra.mxu0 %vm499_vm0, %v3055_v26  ;;  %2755 = vmatmul.mubr.msk.f32.vlgmr.msra.gmra.mxu1 %vm499_vm0, %v3055_v26  ;;  %v2513_v26 = vld [vmem:[%s3329_s7 + $0x1] ss:$0 sm:$0xff] }
  0x48   : > { %2757 = vmatprep.subr.mxu0 %v2853_v2  ;;  %2762 = vmatprep.subr.mxu1 %v2853_v2 }
  0x49   : > { %2759 = vmatprep.mubr.msk.f32.mxu0 %vm2854_vm1, %v2853_v2  ;;  %2764 = vmatprep.mubr.msk.f32.mxu1 %vm2854_vm1, %v2853_v2 }
  0xd4   : > { %v569_v51 = vpop.f32.mrf.mxu0 }
  0xd5   : > { %v570_v63 = vadd.f32 %v2496_v59, %v569_v51 }
  0xd6   : > { %v2635_v52 = vpop.f32.mrf.mxu0  ;;  %v639_v53 = vpop.f32.mrf.mxu1 }
  0xd7   : > { %v640_v0 = vadd.f32 %v2497_v60, %v639_v53  ;;  %v783_v8 = vmul.f32 0.35355338, %v570_v63 }
  0xd8   : > { %v2646_v54 = vpop.f32.mrf.mxu1 }
  0xd9   : > { %v784_v10 = vmul.f32 0.35355338, %v640_v0  ;;  %v2514_v0 = vld [vmem:[%s3329_s7 + $0x2] ss:$0 sm:$0xff] }
  0xde   : > { %v709_v55 = vpop.f32.mrf.mxu0 }
  0xdf   : > { %v710_v15 = vadd.f32 %v2498_v11, %v709_v55 }
  0xe0   : > { %v2657_v56 = vpop.f32.mrf.mxu0  ;;  %v779_v57 = vpop.f32.mrf.mxu1 }
  0xe1   : > { %v780_v16 = vadd.f32 %v2499_v12, %v779_v57  ;;  %v785_v23 = vmul.f32 0.35355338, %v710_v15 }
  0xe2   : > { %v2668_v58 = vpop.f32.mrf.mxu1 }
  0xe3   : > { %v786_v24 = vmul.f32 0.35355338, %v780_v16  ;;  %v2080_v16 = vld [vmem:[%s3330_s8] sm:$0xff] }
  0xe9   : > { %v900_v1 = vpop.f32.mrf.mxu0  ;;  %v970_v3 = vpop.f32.mrf.mxu1 }
  0xea   : > { %v901_v4 = vadd.f32 %v2504_v61, %v900_v1  ;;  %v971_v5 = vadd.f32 %v2505_v62, %v970_v3 }
  0xeb   : > { %v2679_v6 = vpop.f32.mrf.mxu0  ;;  %v2690_v7 = vpop.f32.mrf.mxu1 }
  0xec   : > { %2758 = vmatpush3.xpose.msk.msra.mxu0 %vm1439_vm2, %v901_v4  ;;  %2763 = vmatpush3.xpose.msk.msra.mxu1 %vm1439_vm2, %v971_v5  ;;  %v2515_v6 = vld [vmem:[%s3329_s7 + $0x3] ss:$0 sm:$0xff] }
  0xed   : > { %2767 = vmatprep.subr.mxu0 %v2853_v2  ;;  %2772 = vmatprep.subr.mxu1 %v2853_v2 }
  0xef   : > { %2760 = vmatmul.mubr.msk.f32.vlgmr.msra.gmra.mxu0 %vm1439_vm2, %v783_v8  ;;  %2765 = vmatmul.mubr.msk.f32.vlgmr.msra.gmra.mxu1 %vm1439_vm2, %v784_v10 }
  0xf0   : > { %2769 = vmatprep.mubr.msk.f32.mxu0 %vm2854_vm1, %v2853_v2  ;;  %2774 = vmatprep.mubr.msk.f32.mxu1 %vm2854_vm1, %v2853_v2 }
  0xf3   : > { %v1040_v17 = vpop.f32.mrf.mxu0  ;;  %v1110_v18 = vpop.f32.mrf.mxu1 }
  0xf4   : > { %v1041_v19 = vadd.f32 %v2506_v13, %v1040_v17  ;;  %v1111_v20 = vadd.f32 %v2507_v14, %v1110_v18  ;;  %v2081_v17 = vld [vmem:[%s3330_s8 + $0x8] sm:$0xff] }
  0xf5   : > { %v2701_v21 = vpop.f32.mrf.mxu0  ;;  %v2712_v22 = vpop.f32.mrf.mxu1 }
  0xf6   : > { %2768 = vmatpush3.xpose.msk.msra.mxu0 %vm1439_vm2, %v1041_v19  ;;  %2773 = vmatpush3.xpose.msk.msra.mxu1 %vm1439_vm2, %v1111_v20 }
  0xf7   : > { %2777 = vmatprep.subr.mxu0 %v2853_v2  ;;  %2782 = vmatprep.subr.mxu1 %v2853_v2 }
  0xf9   : > { %2770 = vmatmul.mubr.msk.f32.vlgmr.msra.gmra.mxu0 %vm1439_vm2, %v785_v23  ;;  %2775 = vmatmul.mubr.msk.f32.vlgmr.msra.gmra.mxu1 %vm1439_vm2, %v786_v24 }
  0xfa   : > { %2779 = vmatprep.mubr.msk.f32.mxu0 %vm2854_vm1, %v2853_v2  ;;  %2784 = vmatprep.mubr.msk.f32.mxu1 %vm2854_vm1, %v2853_v2 }
  0xfe   : > { %v1224_v27 = vpop.f32.mrf.mxu0  ;;  %v1294_v28 = vpop.f32.mrf.mxu1 }
  0xff   : > { %v1225_v29 = vadd.f32 %v2512_v25, %v1224_v27  ;;  %v1295_v30 = vadd.f32 %v2513_v26, %v1294_v28  ;;  %v2082_v25 = vld [vmem:[%s3330_s8 + $0x10] sm:$0xff] }
 0x100   : > { %v2723_v31 = vpop.f32.mrf.mxu0  ;;  %v2734_v32 = vpop.f32.mrf.mxu1 }
 0x101   : > { %2778 = vmatpush3.msra.mxu0 %v1225_v29  ;;  %2783 = vmatpush3.msra.mxu1 %v1295_v30  ;;  %v2083_v30 = vld [vmem:[%s3330_s8 + $0x18] sm:$0xff] }
 0x102   : > { %2787 = vmatprep.subr.mxu0 %v2853_v2  ;;  %2792 = vmatprep.subr.mxu1 %v2853_v2 }
 0x107   : > { %v1364_v33 = vpop.f32.mrf.mxu0  ;;  %v1434_v34 = vpop.f32.mrf.mxu1 }
 0x108   : > { %v1365_v5 = vadd.f32 %v2514_v0, %v1364_v33  ;;  %v1435_v10 = vadd.f32 %v2515_v6, %v1434_v34 }
 0x109   : > { %v2745_v35 = vpop.f32.mrf.mxu0  ;;  %v2756_v36 = vpop.f32.mrf.mxu1 }
 0x1af   : > { %v1512_v38 = vpop.f32.mrf.mxu0  ;;  %v1588_v39 = vpop.f32.mrf.mxu1 }
 0x1b0   : > { %v1513_v40 = vadd.f32 %v1512_v38, %v1438_v37  ;;  %v1589_v43 = vadd.f32 %v1588_v39, %v1438_v37 }
 0x1b1   : > { %v2761_v41 = vpop.f32.mrf.mxu0  ;;  %v2766_v42 = vpop.f32.mrf.mxu1 }
 0x1b2   : > { %v1744_v44 = vsel %vm1439_vm2, %v1513_v40, -inf  ;;  %v1747_v45 = vsel %vm1439_vm2, %v1589_v43, -inf }
 0x1b3   : > { %1745 = vmax.xlane.f32.xlu0 %v1744_v44 }
 0x1b7   : > { %1748 = vmax.xlane.f32.xlu0 %v1747_v45 }
 0x1b9   : > { %v1740_v46 = vpop.f32.mrf.mxu1  ;;  %v1664_v47 = vpop.f32.mrf.mxu0 }
 0x1ba   : > { %v1665_v48 = vadd.f32 %v1664_v47, %v1438_v37  ;;  %v1741_v51 = vadd.f32 %v1740_v46, %v1438_v37 }
 0x1bb   : > { %v2771_v49 = vpop.f32.mrf.mxu0  ;;  %v2776_v50 = vpop.f32.mrf.mxu1 }
 0x1bc   : > { %v1750_v52 = vsel %vm1439_vm2, %v1665_v48, -inf  ;;  %v1753_v53 = vsel %vm1439_vm2, %v1741_v51, -inf }
 0x1bd   : > { %1751 = vmax.xlane.f32.xlu1 %v1750_v52  ;;  %v2536_v52 = vld [vmem:[%s3331_s9] ss:$0 sm:$0xff] }
 0x1c1   : > { %1754 = vmax.xlane.f32.xlu1 %v1753_v53 }
 0x23c   : > { %v1746_v54 = vpop.xlane.xlu0 %1745 }
 0x23d   : > { %v1756_v55 = vsub.f32 %v1513_v40, %v1746_v54 }
 0x23f   : > { %v1760_v56 = vmul.f32 1.442695, %v1756_v55 }
 0x240   : > { %v1749_v57 = vpop.xlane.xlu0 %1748 }
 0x241   : > { %2827 = vpow2.f32 %v1760_v56  ;;  %v1757_v58 = vsub.f32 %v1589_v43, %v1749_v57 }
 0x243   : > { %v1762_v59 = vmul.f32 1.442695, %v1757_v58 }
 0x245   : > { %2829 = vpow2.f32 %v1762_v59 }
 0x246   : > { %v1752_v60 = vpop.xlane.xlu1 %1751 }
 0x247   : > { %v1758_v61 = vsub.f32 %v1665_v48, %v1752_v60 }
 0x249   : > { %v1764_v62 = vmul.f32 1.442695, %v1758_v61 }
 0x24a   : > { %v1755_v63 = vpop.xlane.xlu1 %1754 }
 0x24b   : > { %2831 = vpow2.f32 %v1764_v62  ;;  %v1759_v1 = vsub.f32 %v1741_v51, %v1755_v63 }
 0x24d   : > { %v1766_v3 = vmul.f32 1.442695, %v1759_v1 }
 0x24e   : > { %v2828_v4 = vpop.eup %2827 }
 0x24f   : > { %2833 = vpow2.f32 %v1766_v3  ;;  %2780 = vmatmul.mubr.msk.f32.vlgmr.msra.gmra.mxu0 %vm1439_vm2, %v2828_v4  ;;  %v1768_v7 = vsel %vm1439_vm2, %v2828_v4, 0.0 }
 0x250   : > { %2788 = vmatpush3.msra.mxu0 %v1365_v5  ;;  %1769 = vadd.xlane.f32.xlu0 %v1768_v7  ;;  %v2538_v5 = vld [vmem:[%s3334_s12] ss:$0 sm:$0xff] }
 0x251   : > { %2789 = vmatprep.mubr.msk.f32.mxu0 %vm2854_vm1, %v2853_v2  ;;  %2797 = vmatprep.subr.mxu0 %v2853_v2 }
 0x252   : > { %v2830_v8 = vpop.eup %2829 }
 0x253   : > { %2785 = vmatmul.mubr.msk.f32.vlgmr.msra.gmra.mxu1 %vm1439_vm2, %v2830_v8  ;;  %v1771_v11 = vsel %vm1439_vm2, %v2830_v8, 0.0 }
 0x254   : > { %2793 = vmatpush3.msra.mxu1 %v1435_v10  ;;  %1772 = vadd.xlane.f32.xlu1 %v1771_v11 }
 0x255   : > { %2794 = vmatprep.mubr.msk.f32.mxu1 %vm2854_vm1, %v2853_v2  ;;  %2802 = vmatprep.subr.mxu1 %v2853_v2 }
 0x258   : > { %v2832_v12 = vpop.eup %2831 }
 0x259   : > { %2790 = vmatmul.mubr.msk.f32.vlgmr.msra.gmra.mxu0 %vm1439_vm2, %v2832_v12  ;;  %v1774_v13 = vsel %vm1439_vm2, %v2832_v12, 0.0 }
 0x25a   : > { %1775 = vadd.xlane.f32.xlu0 %v1774_v13  ;;  %2799 = vmatprep.mubr.msk.f32.mxu0 %vm2854_vm1, %v2853_v2 }
 0x25b   : > { %2798 = vmatpush3.msra.mxu0 %v2080_v16 }
 0x25c   : > { %v2834_v14 = vpop.eup %2833  ;;  %2807 = vmatprep.subr.mxu0 %v2853_v2 }
 0x25d   : > { %2795 = vmatmul.mubr.msk.f32.vlgmr.msra.gmra.mxu1 %vm1439_vm2, %v2834_v14  ;;  %v1777_v15 = vsel %vm1439_vm2, %v2834_v14, 0.0 }
 0x25e   : > { %1778 = vadd.xlane.f32.xlu1 %v1777_v15  ;;  %2804 = vmatprep.mubr.msk.f32.mxu1 %vm2854_vm1, %v2853_v2 }
 0x25f   : > { %2803 = vmatpush3.msra.mxu1 %v2081_v17 }
 0x260   : > { %2812 = vmatprep.subr.mxu1 %v2853_v2 }
 0x2d9   : > { %v1770_v18 = vpop.xlane.xlu0 %1769 }
 0x2da   : > { %2835 = vrcp.f32 %v1770_v18 }
 0x2dd   : > { %v1773_v19 = vpop.xlane.xlu1 %1772 }
 0x2de   : > { %2837 = vrcp.f32 %v1773_v19 }
 0x2e3   : > { %v1776_v20 = vpop.xlane.xlu0 %1775 }
 0x2e4   : > { %2839 = vrcp.f32 %v1776_v20 }
 0x2e7   : > { %v1779_v21 = vpop.xlane.xlu1 %1778  ;;  %v2836_v22 = vpop.eup %2835 }
 0x2e8   : > { %2841 = vrcp.f32 %v1779_v21 }
 0x2eb   : > { %v2838_v27 = vpop.eup %2837 }
 0x2f1   : > { %v2840_v32 = vpop.eup %2839 }
 0x2f5   : > { %v2842_v36 = vpop.eup %2841 }
 0x30f   : > { %v1849_v23 = vpop.f32.mrf.mxu0 }
 0x310   : > { %v2076_v24 = vmul.f32 %v2836_v22, %v1849_v23 }
 0x311   : > { %v2781_v26 = vpop.f32.mrf.mxu0 }
 0x312   : > { %2800 = vmatmul.mubr.msk.f32.vlgmr.msra.gmra.mxu0 %vm1439_vm2, %v2076_v24 }
 0x313   : > { %v1922_v28 = vpop.f32.mrf.mxu1  ;;  %2808 = vmatpush3.msra.mxu0 %v2082_v25  ;;  %2809 = vmatprep.mubr.msk.f32.mxu0 %vm2854_vm1, %v2853_v2 }
 0x314   : > { %v2077_v29 = vmul.f32 %v2838_v27, %v1922_v28 }
 0x315   : > { %v2786_v31 = vpop.f32.mrf.mxu1 }
 0x316   : > { %2805 = vmatmul.mubr.msk.f32.vlgmr.msra.gmra.mxu1 %vm1439_vm2, %v2077_v29 }
 0x317   : > { %2813 = vmatpush3.msra.mxu1 %v2083_v30  ;;  %2814 = vmatprep.mubr.msk.f32.mxu1 %vm2854_vm1, %v2853_v2 }
 0x319   : > { %v1995_v33 = vpop.f32.mrf.mxu0 }
 0x31a   : > { %v2078_v34 = vmul.f32 %v2840_v32, %v1995_v33 }
 0x31b   : > { %v2791_v35 = vpop.f32.mrf.mxu0 }
 0x31c   : > { %2810 = vmatmul.mubr.msk.f32.vlgmr.msra.gmra.mxu0 %vm1439_vm2, %v2078_v34 }
 0x31d   : > { %v2068_v37 = vpop.f32.mrf.mxu1 }
 0x31e   : > { %v2079_v38 = vmul.f32 %v2842_v36, %v2068_v37 }
 0x31f   : > { %v2796_v39 = vpop.f32.mrf.mxu1 }
 0x320   : > { %2815 = vmatmul.mubr.msk.f32.vlgmr.msra.gmra.mxu1 %vm1439_vm2, %v2079_v38 }
 0x3d2   : > { %v2153_v40 = vpop.f32.mrf.mxu0 }
 0x3d3   : > { %v2376_v2 = vsel %vm499_vm0, %v2153_v40, 0.0 }
 0x3d4   : > { %v2801_v41 = vpop.f32.mrf.mxu0 }
 0x3d6   : > { %v2226_v42 = vpop.f32.mrf.mxu1 }
 0x3d7   : > { %v2377_v44 = vsel %vm499_vm0, %v2226_v42, 0.0 }
 0x3d8   : > { %v2806_v43 = vpop.f32.mrf.mxu1  ;;  %v2378_v47 = vadd.f32 %v2377_v44, %v2376_v2 }
 0x3dc   : > { %v2299_v45 = vpop.f32.mrf.mxu0 }
 0x3dd   : > { %v2379_v46 = vsel %vm499_vm0, %v2299_v45, 0.0 }
 0x3de   : > { %v2811_v48 = vpop.f32.mrf.mxu0  ;;  %v2380_v49 = vadd.f32 %v2379_v46, %v2378_v47 }
 0x3e0   : > { %v2372_v50 = vpop.f32.mrf.mxu1 }
 0x3e1   : > { %v2381_v51 = vsel %vm499_vm0, %v2372_v50, 0.0 }
 0x3e2   : > { %v2382_v53 = vadd.f32 %v2381_v51, %v2380_v49  ;;  %v2816_v54 = vpop.f32.mrf.mxu1 }
 0x3e4   : > { %v2390_v55 = vadd.f32 %v2536_v52, %v2382_v53 }
 0x3e6   : > { %v2393_v56 = vadd.f32 %v2390_v55, %v2969_v9  ;;  %v2537_v9 = vld [vmem:[%s3333_s11] ss:$0 sm:$0xff] }
 0x3e8   : > { %v2394_v57 = vsel %vm499_vm0, %v2393_v56, 0.0 }
 0x3e9   : > { %2395 = vadd.xlane.f32.xlu0 %v2394_v57 }
 0x472   : > { %v2396_v58 = vpop.xlane.xlu0 %2395 }
 0x473   : > { %v2398_v59 = vmul.f32 0.03125, %v2396_v58 }
 0x475   : > { %v2399_v60 = vsub.f32 %v2393_v56, %v2398_v59 }
 0x477   : > { %v2400_v61 = vmul.f32 %v2399_v60, %v2399_v60 }
 0x479   : > { %v2401_v62 = vsel %vm499_vm0, %v2400_v61, 0.0 }
 0x47a   : > { %2402 = vadd.xlane.f32.xlu1 %v2401_v62 }
 0x503   : > { %v2403_v63 = vpop.xlane.xlu1 %2402 }
 0x504   : > { %v2404_v0 = vmul.f32 0.03125, %v2403_v63 }
 0x506   : > { %v2405_v1 = vadd.f32 1e-05, %v2404_v0 }
 0x508   : > { %2843 = vrsqrt.f32 %v2405_v1 }
 0x515   : > { %v2844_v3 = vpop.eup %2843 }
 0x516   : > { %v2407_v4 = vmul.f32 %v2844_v3, %v2399_v60 }
 0x518   : > { %v2414_v6 = vmul.f32 %v2537_v9, %v2407_v4 }
 0x51a   : > { %v2421_v7 = vadd.f32 %v2538_v5, %v2414_v6 }
 0x51c   : > { %2422 = vst.msk [vmem:[%s452_s19] sm:$0xff] %vm499_vm0, %v2421_v7 }
 0x51d PF: > { %s23_s25 = sadd.s32 1, %s2851_s25  }
 0x51e   : > { %p20_p4 = scmp.ge.s32.totalorder %s23_s25, 4  }
 0x520   :  { %22 = sbr.rel (!%p20_p4) target bundleno = 1 (0x1), region = 105 }

</bundles_post_ra>
